<compile_context>
chip_gen: v7x
topology: tpu7x:2x2x1
jax: 0.10.0
libtpu: 0.0.40
codegen_flags: <defaults>
</compile_context>

<pallas_src>
import functools
import math

import jax
import jax.numpy as jnp
from jax import lax
from jax.experimental import pallas as pl
from jax.experimental.pallas import tpu as pltpu


def _pow_gamma(x, gamma):
    """x**gamma, specialized to repeated VPU multiplies for small int gamma."""
    g = float(gamma)
    if g == 0.0:
        return jnp.ones_like(x)
    if g == int(g) and 1.0 <= g <= 8.0:
        r = x
        for _ in range(int(g) - 1):
            r = r * x
        return r
    return x ** g


def _focal_kernel(gamma, l_total, need_mask, x_ref, t_ref, a_ref, out_ref):
    n_i = pl.program_id(0)
    l_i = pl.program_id(1)

    @pl.when(jnp.logical_and(n_i == 0, l_i == 0))
    def _():
        out_ref[...] = jnp.zeros_like(out_ref)

    x = x_ref[0].astype(jnp.float32)     # (C, TILE_L) logits, pixels on lanes
    t = t_ref[0]                         # (1, TILE_L) int32 class indices
    alpha = a_ref[...]                   # (C, 1)      f32 per-class weights

    c, tile_l = x.shape

    # log_softmax pieces over the (small) class / sublane axis.
    m = jnp.max(x, axis=0, keepdims=True)                # (1, TILE_L)
    z = x - m
    ez = jnp.exp(z)                                       # (C, TILE_L)
    s = jnp.sum(ez, axis=0, keepdims=True)                # (1, TILE_L)

    # One-hot gather of the target class along the sublane axis (reused for
    # logpt, pt numerator and alpha_t).
    row = lax.broadcasted_iota(jnp.int32, (c, tile_l), 0)
    onehot = (row == t).astype(jnp.float32)               # (C, TILE_L)

    z_t = jnp.sum(z * onehot, axis=0, keepdims=True)      # (1, TILE_L)
    e_t = jnp.sum(ez * onehot, axis=0, keepdims=True)     # (1, TILE_L)
    a_t = jnp.sum(alpha * onehot, axis=0, keepdims=True)  # (1, TILE_L)

    logpt = z_t - jnp.log(s)                              # log p_t
    pt = e_t / s                                          # p_t (reuses exp(z))

    loss = -_pow_gamma(1.0 - pt, gamma) * a_t * logpt     # (1, TILE_L)

    if need_mask:
        # Mask pixel columns past the true count (ragged last tile). where()
        # is NaN-safe against any unspecified boundary data.
        col = l_i * tile_l + lax.broadcasted_iota(jnp.int32, (1, tile_l), 1)
        loss = jnp.where(col < l_total, loss, 0.0)

    out_ref[...] += loss                                  # per-lane partials


def focal_loss_pallas(x, target, alpha_arr, gamma=2.0, size_average=True,
                      tile_l=None):
    """x: (N, C, *spatial) float logits; target: (N, *spatial) int indices."""
    if x.ndim > 2:
        N, C = x.shape[0], x.shape[1]
        L = int(math.prod(x.shape[2:]))
        x3 = x.reshape(N, C, L)                           # free view of NCHW
        t3 = target.reshape(N, 1, L).astype(jnp.int32)
    else:
        # 2D (rows, C) logits: put rows on lanes (cold path, small transpose).
        C = x.shape[1]
        N, L = 1, x.shape[0]
        x3 = x.T.reshape(1, C, L)
        t3 = target.reshape(1, 1, L).astype(jnp.int32)
    rows = N * L

    # Large lane-dense pixel tiles, capped so a double-buffered logits block
    # stays ~<= 8 MiB even for large class counts.
    if tile_l is None:
        budget = (4 * 1024 * 1024) // (4 * max(C, 1))     # ~4 MiB per x buffer
        cap = max(128, min(8192, (budget // 128) * 128))
    else:
        cap = int(tile_l)
    if L % 128 == 0:
        tl = min(L, cap)
    elif L <= cap:
        tl = L                                            # full-dim block
    else:
        tl = cap
    num_l = pl.cdiv(L, tl)
    need_mask = (L % tl) != 0                             # compile-time flag

    # Per-class weights as a (C, 1) column, resident in VMEM across the grid.
    # (PyTorch gathers alpha by class index; pad with 1.0 if shorter than C.)
    alpha_arr = jnp.asarray(alpha_arr, dtype=jnp.float32).reshape(-1)
    A = alpha_arr.shape[0]
    if A >= C:
        alpha_c = alpha_arr[:C]
    else:
        alpha_c = jnp.concatenate([alpha_arr, jnp.ones((C - A,), jnp.float32)])
    alpha2 = alpha_c.reshape(C, 1)

    out = pl.pallas_call(
        functools.partial(_focal_kernel, float(gamma), L, need_mask),
        out_shape=jax.ShapeDtypeStruct((1, tl), jnp.float32),
        grid_spec=pltpu.PrefetchScalarGridSpec(
            num_scalar_prefetch=0,
            grid=(N, num_l),
            in_specs=[
                pl.BlockSpec((1, C, tl), lambda n, l: (n, 0, l)),  # logits
                pl.BlockSpec((1, 1, tl), lambda n, l: (n, 0, l)),  # targets
                pl.BlockSpec((C, 1), lambda n, l: (0, 0)),         # alpha
            ],
            out_specs=pl.BlockSpec((1, tl), lambda n, l: (0, 0)),  # resident acc
        ),
        compiler_params=pltpu.CompilerParams(
            # Output accumulator is carried across both axes -> arbitrary.
            dimension_semantics=("arbitrary", "arbitrary")),
    )(x3, t3, alpha2)

    total = jnp.sum(out)
    if size_average:
        return total / rows
    return total


def focal_loss_ref(x, target, alpha_arr, gamma=2.0, size_average=True):
    """Pure-JAX reference mirroring the PyTorch forward."""
    N, C = x.shape[0], x.shape[1]
    x2 = x.reshape(N, C, -1).transpose(0, 2, 1).reshape(-1, C)
    t = target.reshape(-1).astype(jnp.int32)
    logp = jax.nn.log_softmax(x2, axis=-1)
    logpt = jnp.take_along_axis(logp, t[:, None], axis=1)[:, 0]
    pt = jnp.exp(logpt)
    at = jnp.asarray(alpha_arr, jnp.float32)[t]
    logpt = logpt * at
    loss = -1.0 * (1.0 - pt) ** gamma * logpt
    return loss.mean() if size_average else loss.sum()


def _build_alpha(alpha, C):
    # Mirrors FocalLoss.__init__: float -> [a, 1-a]; list -> tensor(list).
    if isinstance(alpha, (float, int)):
        return jnp.array([alpha, 1.0 - alpha], dtype=jnp.float32)
    if isinstance(alpha, (list, tuple)):
        return jnp.array(alpha, dtype=jnp.float32)
    return alpha


if __name__ == "__main__":
    # Deterministic "config": gamma, per-class alpha list (length C),
    # size_average=True.
    gamma = 2.0
    C = 4
    alpha_cfg = [0.1, 0.2, 0.3, 0.4]
    size_average = True
    alpha_arr = _build_alpha(alpha_cfg, C)

    key = jax.random.PRNGKey(0)
    kx, kt = jax.random.split(key)
    N, H, W = 2, 16, 16
    x = jax.random.normal(kx, (N, C, H, W), dtype=jnp.float32)   # NCHW logits
    target = jax.random.randint(kt, (N, H, W), 0, C, dtype=jnp.int32)

    out = focal_loss_pallas(x, target, alpha_arr, gamma=gamma,
                            size_average=size_average)
    out = jax.block_until_ready(out)

    ref = focal_loss_ref(x, target, alpha_arr, gamma=gamma,
                         size_average=size_average)
    assert jnp.allclose(out, ref, rtol=1e-5, atol=1e-6), (out, ref)

    print("KERNEL_OK")
</pallas_src>

<mosaic_0001>
module attributes {stable_mosaic.version = 11 : i64} {
  func.func @_focal_kernel(%arg0: i32, %arg1: i32, %arg2: memref<1x4x256xf32, #tpu.memory_space<vmem>>, %arg3: memref<1x1x256xi32, #tpu.memory_space<vmem>>, %arg4: memref<4x1xf32, #tpu.memory_space<vmem>>, %arg5: memref<1x256xf32, #tpu.memory_space<vmem>>) attributes {dimension_semantics = [#tpu.dimension_semantics<arbitrary>, #tpu.dimension_semantics<arbitrary>], iteration_bounds = array<i64: 2, 1>, scalar_prefetch = 0 : i64, scratch_operands = 0 : i64, tpu.core_type = #tpu.core_type<tc>, window_params = [{transform_indices = @transform_0, window_bounds = array<i64: 1, 4, 256>}, {transform_indices = @transform_1, window_bounds = array<i64: 1, 1, 256>}, {pipeline_mode = #tpu.pipeline_mode<synchronous>, transform_indices = @transform_2, window_bounds = array<i64: 4, 1>}, {pipeline_mode = #tpu.pipeline_mode<synchronous>, transform_indices = @transform_3, window_bounds = array<i64: 1, 256>}]} {
    %c0_i32 = arith.constant 0 : i32
    %0 = arith.cmpi eq, %arg0, %c0_i32 : i32
    %c0_i32_0 = arith.constant 0 : i32
    %1 = arith.cmpi eq, %arg1, %c0_i32_0 : i32
    %2 = arith.andi %0, %1 : i1
    %3 = arith.extui %2 : i1 to i32
    %c0_i32_1 = arith.constant 0 : i32
    %4 = arith.cmpi ne, %3, %c0_i32_1 : i32
    scf.if %4 {
      %cst_19 = arith.constant 0.000000e+00 : f32
      %45 = vector.broadcast %cst_19 : f32 to vector<1x256xf32>
      %c0_20 = arith.constant 0 : index
      %c0_21 = arith.constant 0 : index
      %46 = vector.load %arg5[%c0_20, %c0_21] : memref<1x256xf32, #tpu.memory_space<vmem>>, vector<1x256xf32>
      tpu.vector_store %arg5[%c0_20, %c0_21], %45 {strides = array<i32>} : memref<1x256xf32, #tpu.memory_space<vmem>>, vector<1x256xf32>,
    } else {
    }
    %c0 = arith.constant 0 : index
    %c0_2 = arith.constant 0 : index
    %c0_3 = arith.constant 0 : index
    %5 = vector.load %arg2[%c0, %c0_2, %c0_3] : memref<1x4x256xf32, #tpu.memory_space<vmem>>, vector<1x4x256xf32>
    %6 = vector.shape_cast %5 : vector<1x4x256xf32> to vector<4x256xf32>
    %c0_4 = arith.constant 0 : index
    %c0_5 = arith.constant 0 : index
    %c0_6 = arith.constant 0 : index
    %7 = vector.load %arg3[%c0_4, %c0_5, %c0_6] : memref<1x1x256xi32, #tpu.memory_space<vmem>>, vector<1x1x256xi32>
    %8 = vector.shape_cast %7 : vector<1x1x256xi32> to vector<1x256xi32>
    %c0_7 = arith.constant 0 : index
    %c0_8 = arith.constant 0 : index
    %9 = vector.load %arg4[%c0_7, %c0_8] : memref<4x1xf32, #tpu.memory_space<vmem>>, vector<4x1xf32>
    %cst = arith.constant dense<0xFF800000> : vector<256xf32>
    %10 = vector.multi_reduction <maximumf>, %6, %cst [0] : vector<4x256xf32> to vector<256xf32>
    %11 = vector.shape_cast %10 : vector<256xf32> to vector<1x256xf32>
    %12 = vector.broadcast %11 : vector<1x256xf32> to vector<4x256xf32>
    %13 = arith.subf %6, %12 : vector<4x256xf32>
    %14 = math.exp %13 : vector<4x256xf32>
    %cst_9 = arith.constant dense<0.000000e+00> : vector<256xf32>
    %15 = vector.multi_reduction <add>, %14, %cst_9 [0] : vector<4x256xf32> to vector<256xf32>
    %16 = vector.shape_cast %15 : vector<256xf32> to vector<1x256xf32>
    %17 = tpu.iota {dimensions = array<i32: 0>} : vector<4x256xi32>
    %18 = vector.broadcast %8 : vector<1x256xi32> to vector<4x256xi32>
    %19 = arith.cmpi eq, %17, %18 : vector<4x256xi32>
    %20 = arith.extui %19 : vector<4x256xi1> to vector<4x256xi32>
    %21 = arith.sitofp %20 : vector<4x256xi32> to vector<4x256xf32>
    %22 = arith.mulf %13, %21 : vector<4x256xf32>
    %cst_10 = arith.constant dense<0.000000e+00> : vector<256xf32>
    %23 = vector.multi_reduction <add>, %22, %cst_10 [0] : vector<4x256xf32> to vector<256xf32>
    %24 = vector.shape_cast %23 : vector<256xf32> to vector<1x256xf32>
    %25 = arith.mulf %14, %21 : vector<4x256xf32>
    %cst_11 = arith.constant dense<0.000000e+00> : vector<256xf32>
    %26 = vector.multi_reduction <add>, %25, %cst_11 [0] : vector<4x256xf32> to vector<256xf32>
    %27 = vector.shape_cast %26 : vector<256xf32> to vector<1x256xf32>
    %28 = vector.broadcast %9 : vector<4x1xf32> to vector<4x256xf32>
    %29 = arith.mulf %28, %21 : vector<4x256xf32>
    %cst_12 = arith.constant dense<0.000000e+00> : vector<256xf32>
    %30 = vector.multi_reduction <add>, %29, %cst_12 [0] : vector<4x256xf32> to vector<256xf32>
    %31 = vector.shape_cast %30 : vector<256xf32> to vector<1x256xf32>
    %32 = math.log %16 : vector<1x256xf32>
    %33 = arith.subf %24, %32 : vector<1x256xf32>
    %34 = arith.divf %27, %16 : vector<1x256xf32>
    %cst_13 = arith.constant 1.000000e+00 : f32
    %35 = vector.broadcast %cst_13 : f32 to vector<1x256xf32>
    %36 = arith.subf %35, %34 : vector<1x256xf32>
    %37 = arith.mulf %36, %36 : vector<1x256xf32>
    %cst_14 = arith.constant 0.000000e+00 : f32
    %38 = vector.broadcast %cst_14 : f32 to vector<1x256xf32>
    %39 = arith.subf %38, %37 : vector<1x256xf32>
    %40 = arith.mulf %39, %31 : vector<1x256xf32>
    %41 = arith.mulf %40, %33 : vector<1x256xf32>
    %c0_15 = arith.constant 0 : index
    %c0_16 = arith.constant 0 : index
    %42 = vector.load %arg5[%c0_15, %c0_16] : memref<1x256xf32, #tpu.memory_space<vmem>>, vector<1x256xf32>
    %43 = arith.addf %42, %41 : vector<1x256xf32>
    %c0_17 = arith.constant 0 : index
    %c0_18 = arith.constant 0 : index
    %44 = vector.load %arg5[%c0_17, %c0_18] : memref<1x256xf32, #tpu.memory_space<vmem>>, vector<1x256xf32>
    tpu.vector_store %arg5[%c0_17, %c0_18], %43 {strides = array<i32>} : memref<1x256xf32, #tpu.memory_space<vmem>>, vector<1x256xf32>,
    return
  }
  func.func @transform_0(%arg0: i32, %arg1: i32) -> (i32, i32, i32) {
    %c0_i32 = arith.constant 0 : i32
    %c0_i32_0 = arith.constant 0 : i32
    return %arg0, %c0_i32, %arg1 : i32, i32, i32
  }
  func.func @transform_1(%arg0: i32, %arg1: i32) -> (i32, i32, i32) {
    %c0_i32 = arith.constant 0 : i32
    %c0_i32_0 = arith.constant 0 : i32
    return %arg0, %c0_i32, %arg1 : i32, i32, i32
  }
  func.func @transform_2(%arg0: i32, %arg1: i32) -> (i32, i32) {
    %c0_i32 = arith.constant 0 : i32
    %c0_i32_0 = arith.constant 0 : i32
    %c0_i32_1 = arith.constant 0 : i32
    return %c0_i32, %c0_i32_0 : i32, i32
  }
  func.func @transform_3(%arg0: i32, %arg1: i32) -> (i32, i32) {
    %c0_i32 = arith.constant 0 : i32
    %c0_i32_0 = arith.constant 0 : i32
    %c0_i32_1 = arith.constant 0 : i32
    return %c0_i32, %c0_i32_0 : i32, i32
  }
}

</mosaic_0001>

<bundles_post_ra>
// kernel: tpu_custom_call.1
= control target key start
LH: loop header
LB: loop body
LE: loop exit
PB: predicated region body
PF: predicated region fallthrough
CT: control target
= control target key end

     0   :  { %8 = vsyncpa [#allocation3], 0  ;;  %s902_s0 = inlined_call_operand.hbm [shape: f32[2,4,256], index: 0, kind: input, shape index: {}]   ;;  %s903_s1 = inlined_call_operand.vmem [shape: s32[2,1,256], index: 1, kind: input, shape index: {}]   ;;  %s904_s2 = inlined_call_operand.vmem [shape: f32[4,1], index: 2, kind: input, shape index: {}]   ;;  %s905_s3 = inlined_call_operand.hbm [shape: f32[1,256], index: 3, kind: output, shape index: {}]  }
   0x1   :  { %10 = vsyncpa [#allocation3 + $0x1], 0 }
   0x2   :  { %11 = vsyncpa [#allocation4], 0  ;;  %s721_s12 = smov 0   ;;  %s723_s13 = smov 0  }
   0x3   :  { %s725_s14 = smov 0   ;;  %s727_s15 = smov 0  }
   0x4   :  { %s729_s16 = smov 0   ;;  %s731_s17 = smov 0  }
   0x5 LB: > { %s487_s18 = sadd.s32 4294967295, %s693_s17   ;;  %s29_s19 = sadd.s32 1, %s689_s16  ;;  %s693_s17 = sphi %s731_s17, %s17_s17   ;;  %s689_s16 = sphi %s729_s16, %s916_s16   ;;  %s685_s15 = sphi %s727_s15, %s915_s15   ;;  %s681_s14 = sphi %s725_s14, %s914_s14   ;;  %s677_s13 = sphi %s723_s13, %s913_s13   ;;  %s673_s12 = sphi %s721_s12, %s912_s12  }
   0x6   : > { %p31_p0 = scmp.ge.s32.totalorder %s29_s19, 2  ;;  %s38_s20 = sadd.s32 1, %s681_s14 }
   0x7   : > { %p45_p1 = scmp.ne.s32.totalorder %s681_s14, %s677_s13  ;;  %p46_p2 = scmp.eq.s32.totalorder %s693_s17, 0 }
   0x8   : > { %s918_s19 = smov (%p31_p0, %s29_s19), 0  ;;  %p51_p4 = scmp.ne.s32.totalorder %s677_s13, %s673_s12 }
   0x9   : > { %p757_p3 = por %p46_p2, %p45_p1  ;;  %s33_s22 = ssub.s32 %s689_s16, %s918_s19 }
   0xa   : > { %p52_p5 = scmp.eq.s32.totalorder %s487_s18, 0  ;;  %p36_p6 = scmp.eq.s32.totalorder %s33_s22, 0 }
   0xb   : > { %p515_p8 = scmp.lt.s32.totalorder %s693_s17, 2  ;;  %s148_s25 = sand.u32 1, %s681_s14  }
   0xc   : > { %p766_p7 = por %p52_p5, %p51_p4  ;;  %s503_s26 = sshll.u32 %s689_s16, 7 }
   0xd   : > { %s772_s24 = scalar_select %p36_p6, %s681_s14, %s38_s20  }
   0xe   : > { %s490_s27 = sshll.u32 %s148_s25, 3  ;;  %s779_s30 = scalar_lea.hbm %s902_s0, %s503_s26 }
   0xf   : > { %s152_s4 = scalar_lea.vmem [#allocation2], %s490_s27  ;;  %p783_p9 = pnand %p515_p8, %p757_p3 }
  0x10   : > { %s162_s5 = sshll.u32 %s152_s4, 4  ;;  %s149_s7 = scalar_lea.sflag [#allocation3], %s148_s25  ;;  %s787_s5 = int_to_ptr.vmem [resolvable:$true] %s162_s5 }
  0x11   : > { %s583_s8 = scalar_lea.hbm %s779_s30, 128  ;;  %p585_p13 = pneg %p783_p9 }
  0x12   : > { %p584_p12 = scmp.ne.s32.totalorder %s779_s30, %s583_s8  ;;  %s588_s11 = scalar_lea.hbm %s902_s0, 256 }
  0x13   : > { %p589_p2 = scmp.lt.u32.totalorder %s779_s30, %s902_s0  ;;  %p590_p3 = scmp.lt.u32.totalorder %s588_s11, %s583_s8 }
  0x14   : > { %p586_p0 = pnand %p585_p13, %p584_p12  ;;  %p592_p5 = scmp.lt.u32.totalorder %s583_s8, %s779_s30 }
  0x15   : > { %p591_p4 = por %p590_p3, %p589_p2 }
  0x16   : > { %p587_p1 = pneg %p586_p0 }
  0x17   : > { %p593_p6 = por %p592_p5, %p591_p4 }
  0x19   : > { %p594_p8 = pnand %p593_p6, %p587_p1 }
  0x1b   : > { %597 = shalt.err (!%p594_p8)
}
  0x1c   : > { %s598_s21 = scalar_lea.vmem %s787_s5, 128  ;;  %s695_s22 = smov [#allocation2]  }
  0x1d   : > { %p599_p12 = scmp.ne.s32.totalorder %s787_s5, %s598_s21  ;;  %s603_s25 = sshll.u32 %s695_s22, 4  ;;  %s604_s25 = int_to_ptr.vmem [resolvable:$false] %s603_s25 }
  0x1e   : > { %s605_s26 = scalar_lea.vmem %s604_s25, 256  ;;  %p606_p11 = scmp.lt.s32.totalorder %s787_s5, %s604_s25 }
  0x1f   : > { %p601_p0 = pnand %p599_p12, %p585_p13  ;;  %p607_p2 = scmp.lt.s32.totalorder %s605_s26, %s598_s21 }
  0x21   : > { %p602_p10 = pneg %p601_p0  ;;  %p608_p3 = por %p607_p2, %p606_p11 }
  0x23   : > { %p609_p4 = pnand %p608_p3, %p602_p10 }
  0x25   : > { %612 = shalt.err (!%p609_p4)
}
  0x26   : > { %514 = dma.hbm_to_vmem [thread:$0]  (!%p783_p9), %s779_s30, 128, %s787_s5, %s149_s7  }
  0x27   : > { %p909_p1 = scmp.lt.s32.totalorder %s693_s17, 3  ;;  %p910_p5 = scmp.ge.s32.totalorder %s693_s17, 1 }
  0x29   : > { %p180_p13 = pnand %p910_p5, %p909_p1 }
  0x2a   : > { %s185_s27 = sand.u32 (!%p180_p13), 1, %s677_s13  }
  0x2b   : > { %183 = sbr.rel (%p180_p13) target bundleno = 232 (0xe8), region = 32  ;;  %s494_s28 = sshll.u32 (!%p180_p13), %s185_s27, 3 }
  0x2c   : > { %s186_s29 = scalar_lea.sflag (!%p180_p13), [#allocation3], %s185_s27  ;;  %s189_s4 = scalar_lea.vmem (!%p180_p13), [#allocation2], %s494_s28 }
  0x32   : > { %664 = dma.done.wait (%p766_p7), %s186_s29, 128  }
  0x33   : > { %666 = vsyncadd (%p766_p7), %s186_s29, 4294967168  ;;  %p217_p10 = scmp.lt.s32.totalorder %s685_s15, 1  ;;  %p225_p9 = scmp.eq.s32.totalorder %s685_s15, 0 }
  0x34   : > { %v231_v0 = vlaneseq (%p225_p9)  ;;  %v696_v1 = vmov (%p225_p9), 0.0  }
  0x35   : > { %s920_s15 = smov (!%p217_p10, %s685_s15), 1  ;;  %230 = sbr.rel (!%p225_p9) target bundleno = 60 (0x3c), region = 40 }
  0x36   : > { %s495_s30 = sshll.u32 %s920_s15, 1  ;;  %vm233_vm0 = vcmp.lt.s32.totalorder (%p225_p9), %v231_v0, 256 }
  0x37   : > { %s831_s7 = scalar_lea.vmem %s903_s1, %s495_s30  ;;  %235 = vst.msk [vmem:[#allocation5] sm:$0x3] (%p225_p9), %vm233_vm0, %v696_v1 }
  0x3c PF: > { %v238_v2 = vld [vmem:[%s904_s2] sm:$0xf]  ;;  %v697_v3 = vmov 0   ;;  %vm242_vm1 = vcmask 1043456   ;;  %v281_v22 = vlaneseq  ;;  %v698_v32 = vmov 0.0   ;;  %s700_s15 = smov [#allocation5]  }
  0x3d   : > { %571 = vset.pattern.permute.xlu0 %v697_v3  ;;  %v236_v4 = vld [vmem:[%s189_s4] sm:$0xff]  ;;  %s410_s9 = sshll.u32 %s700_s15, 4  ;;  %p858_p7 = scmp.eq.s32.totalorder %s487_s18, 1  ;;  %s411_s9 = int_to_ptr.vmem [resolvable:$true] %s410_s9 }
  0x3e   : > { %339 = vperm.xlu0 %571, %v238_v2   ;;  %v240_v5 = vcombine.high %v236_v4, %v236_v4  ;;  %v243_v6 = vsel %vm242_vm1, %v236_v4, -inf  ;;  %v839_v24 = vshrl.u32 %v281_v22, 7  ;;  %v237_v27 = vld [vmem:[%s831_s7] sm:$0x3]  ;;  %vm400_vm4 = vcmp.lt.s32.totalorder %v281_v22, 256  ;;  %s613_s11 = scalar_lea.vmem %s411_s9, 32  ;;  %p620_p12 = scmp.lt.s32.totalorder %s411_s9, %s411_s9 }
  0x3f   : > { %v244_v8 = vrot.slane %v243_v6, 4  ;;  %p614_p11 = scmp.ne.s32.totalorder %s411_s9, %s613_s11  ;;  %p621_p0 = scmp.lt.s32.totalorder %s613_s11, %s613_s11 }
  0x40   : > { %v250_v7 = vsel %vm242_vm1, %v240_v5, -inf  ;;  %v285_v25 = vsub.s32 0, %v839_v24  ;;  %v289_v26 = vsub.s32 1, %v839_v24 }
  0x41   : > { %v251_v9 = vrot.slane %v250_v7, 4  ;;  %v245_v10 = vmax.f32 %v243_v6, %v244_v8  ;;  %p615_p6 = pnand %p614_p11, %p858_p7  ;;  %p622_p2 = por %p621_p0, %p620_p12 }
  0x42   : > { %v286_v28 = vrot.slane %v237_v27, %v285_v25  ;;  %v290_v29 = vrot.slane %v237_v27, %v289_v26 }
  0x43   : > { %v252_v11 = vmax.f32 %v250_v7, %v251_v9  ;;  %v246_v12 = vrot.slane %v245_v10, 2  ;;  %p616_p8 = pneg %p615_p6 }
  0x44   : > { %vm291_vm2 = vcmp.eq.s32.totalorder %v839_v24, %v286_v28  ;;  %vm292_vm3 = vcmp.eq.s32.totalorder %v839_v24, %v290_v29 }
  0x45   : > { %v253_v13 = vrot.slane %v252_v11, 2  ;;  %v247_v14 = vmax.f32 %v245_v10, %v246_v12  ;;  %v497_v33 = vsel %vm291_vm2, 1.0, %v698_v32  ;;  %v498_v34 = vsel %vm292_vm3, 1.0, %v698_v32  ;;  %p623_p3 = pnand %p622_p2, %p616_p8 }
  0x46   : > { %v299_v37 = vcombine.low %v497_v33, %v498_v34 }
  0x47   : > { %v254_v15 = vmax.f32 %v252_v11, %v253_v13  ;;  %v248_v16 = vrot.slane %v247_v14, 1 }
  0x49   : > { %v255_v17 = vrot.slane %v254_v15, 1  ;;  %v249_v18 = vmax.f32 %v247_v14, %v248_v16 }
  0x4b   : > { %v256_v19 = vmax.f32 %v254_v15, %v255_v17 }
  0x4d   : > { %v259_v20 = vcombine.low %v249_v18, %v256_v19 }
  0x4f   : > { %v261_v21 = vsub.f32 %v236_v4, %v259_v20 }
  0x51   : > { %v262_v23 = vmul.f32 1.442695, %v261_v21  ;;  %v301_v53 = vmul.f32 %v299_v37, %v261_v21 }
  0x53   : > { %573 = vpow2.f32 %v262_v23  ;;  %v303_v58 = vcombine.high %v301_v53, %v301_v53  ;;  %v305_v62 = vsel %vm242_vm1, %v301_v53, 0.0 }
  0x54   : > { %v306_v2 = vrot.slane %v305_v62, 4 }
  0x55   : > { %v312_v63 = vsel %vm242_vm1, %v303_v58, 0.0 }
  0x56   : > { %v313_v3 = vrot.slane %v312_v63, 4  ;;  %v307_v6 = vadd.f32 %v306_v2, %v305_v62 }
  0x58   : > { %v314_v7 = vadd.f32 %v313_v3, %v312_v63  ;;  %v308_v12 = vrot.slane %v307_v6, 2  ;;  %v378_v63 = vld [vmem:[#allocation5] sm:$0x3] }
  0x5a   : > { %v315_v13 = vrot.slane %v314_v7, 2  ;;  %v309_v17 = vadd.f32 %v308_v12, %v307_v6 }
  0x5c   : > { %v316_v18 = vadd.f32 %v315_v13, %v314_v7  ;;  %v310_v29 = vrot.slane %v309_v17, 1 }
  0x5d   : > { %v574_v30 = vpop.eup %573 }
  0x5e   : > { %v265_v31 = vcombine.high %v574_v30, %v574_v30  ;;  %v267_v35 = vsel %vm242_vm1, %v574_v30, 0.0  ;;  %v319_v40 = vmul.f32 %v574_v30, %v299_v37  ;;  %v317_v30 = vrot.slane %v316_v18, 1 }
  0x5f   : > { %v268_v38 = vrot.slane %v267_v35, 4 }
  0x60   : > { %v274_v36 = vsel %vm242_vm1, %v265_v31, 0.0  ;;  %v321_v43 = vcombine.high %v319_v40, %v319_v40  ;;  %v323_v46 = vsel %vm242_vm1, %v319_v40, 0.0 }
  0x61   : > { %v275_v39 = vrot.slane %v274_v36, 4  ;;  %v269_v41 = vadd.f32 %v268_v38, %v267_v35  ;;  %v324_v50 = vrot.slane %v323_v46, 4 }
  0x62   : > { %v330_v47 = vsel %vm242_vm1, %v321_v43, 0.0 }
  0x63   : > { %v276_v42 = vadd.f32 %v275_v39, %v274_v36  ;;  %v270_v44 = vrot.slane %v269_v41, 2  ;;  %v331_v51 = vrot.slane %v330_v47, 4  ;;  %v325_v55 = vadd.f32 %v324_v50, %v323_v46 }
  0x65   : > { %v277_v45 = vrot.slane %v276_v42, 2  ;;  %v271_v48 = vadd.f32 %v270_v44, %v269_v41  ;;  %v332_v56 = vadd.f32 %v331_v51, %v330_v47  ;;  %v326_v60 = vrot.slane %v325_v55, 2 }
  0x66   : > { %v699_v41 = vmov 1966171168  }
  0x67   : > { %v278_v49 = vadd.f32 %v277_v45, %v276_v42  ;;  %v272_v52 = vrot.slane %v271_v48, 1  ;;  %v333_v61 = vrot.slane %v332_v56, 2  ;;  %v327_v0 = vadd.f32 %v326_v60, %v325_v55 }
  0x68   : > { %v383_v42 = vunpack.c.l.s4 %v699_v41 }
  0x69   : > { %v279_v54 = vrot.slane %v278_v49, 1  ;;  %v273_v57 = vadd.f32 %v272_v52, %v271_v48  ;;  %v334_v1 = vadd.f32 %v333_v61, %v332_v56  ;;  %v328_v4 = vrot.slane %v327_v0, 1 }
  0x6a   : > { %v384_v51 = vunpack.c.0.s8 %v383_v42 }
  0x6b   : > { %v280_v59 = vadd.f32 %v279_v54, %v278_v49  ;;  %575 = vrcp.f32 %v273_v57  ;;  %v335_v5 = vrot.slane %v334_v1, 1  ;;  %v329_v9 = vadd.f32 %v328_v4, %v327_v0 }
  0x6c   : > { %v387_v60 = vsub.s32 %v384_v51, %v839_v24 }
  0x6d   : > { %577 = vrcp.f32 %v280_v59  ;;  %v336_v10 = vadd.f32 %v335_v5, %v334_v1 }
  0x6e   : > { %579 = vlog2.f32 %v273_v57 }
  0x6f   : > { %581 = vlog2.f32 %v280_v59 }
  0x75   : > { %v576_v8 = vpop.eup %575 }
  0x76   : > { %v365_v15 = vmul.f32 %v576_v8, %v329_v9 }
  0x77   : > { %v578_v11 = vpop.eup %577 }
  0x78   : > { %v367_v16 = vmul.f32 %v578_v11, %v336_v10  ;;  %v368_v27 = vsub.f32 1.0, %v365_v15  ;;  %v580_v31 = vpop.eup %579 }
  0x79   : > { %v582_v36 = vpop.eup %581  ;;  %v359_v45 = vmul.f32 0.6931472, %v580_v31 }
  0x7a   : > { %v369_v28 = vsub.f32 1.0, %v367_v16  ;;  %v370_v39 = vmul.f32 %v368_v27, %v368_v27  ;;  %v361_v46 = vmul.f32 0.6931472, %v582_v36 }
  0x7c   : > { %v371_v40 = vmul.f32 %v369_v28, %v369_v28  ;;  %v372_v49 = vsub.f32 0.0, %v370_v39 }
  0x7e   : > { %v373_v50 = vsub.f32 0.0, %v371_v40 }
  0xbd   : > { %v340_v14 = vpop.permute.xlu0 %339 }
  0xbe   : > { %v342_v19 = vmul.f32 %v497_v33, %v340_v14  ;;  %v343_v20 = vmul.f32 %v498_v34, %v340_v14  ;;  %v311_v33 = vadd.f32 %v310_v29, %v309_v17  ;;  %v318_v34 = vadd.f32 %v317_v30, %v316_v18 }
  0xc0   : > { %v344_v21 = vsel %vm242_vm1, %v342_v19, 0.0  ;;  %v351_v23 = vsel %vm242_vm1, %v343_v20, 0.0  ;;  %v362_v54 = vsub.f32 %v311_v33, %v359_v45  ;;  %v363_v55 = vsub.f32 %v318_v34, %v361_v46 }
  0xc1   : > { %v345_v25 = vrot.slane %v344_v21, 4  ;;  %v352_v26 = vrot.slane %v351_v23, 4 }
  0xc3   : > { %v346_v32 = vadd.f32 %v345_v25, %v344_v21  ;;  %v353_v35 = vadd.f32 %v352_v26, %v351_v23 }
  0xc5   : > { %v347_v37 = vrot.slane %v346_v32, 2  ;;  %v354_v38 = vrot.slane %v353_v35, 2 }
  0xc7   : > { %v348_v43 = vadd.f32 %v347_v37, %v346_v32  ;;  %v355_v44 = vadd.f32 %v354_v38, %v353_v35 }
  0xc9   : > { %v349_v47 = vrot.slane %v348_v43, 1  ;;  %v356_v48 = vrot.slane %v355_v44, 1 }
  0xcb   : > { %v350_v52 = vadd.f32 %v349_v47, %v348_v43  ;;  %v357_v53 = vadd.f32 %v356_v48, %v355_v44 }
  0xcd   : > { %v374_v56 = vmul.f32 %v372_v49, %v350_v52  ;;  %v375_v57 = vmul.f32 %v373_v50, %v357_v53 }
  0xcf   : > { %v376_v58 = vmul.f32 %v374_v56, %v362_v54  ;;  %v377_v59 = vmul.f32 %v375_v57, %v363_v55 }
  0xd1   : > { %v381_v61 = vcombine.low %v376_v58, %v377_v59 }
  0xd3   : > { %v388_v62 = vrot.slane %v381_v61, %v387_v60 }
  0xd5   : > { %v395_v0 = vrot.slane %v388_v62, %v387_v60 }
  0xd7   : > { %v397_v1 = vadd.f32 %v395_v0, %v378_v63 }
  0xd9   : > { %402 = vst.msk [vmem:[#allocation5] sm:$0x3] %vm400_vm4, %v397_v1 }
  0xda   : > { %626 = shalt.err (!%p623_p3)
}
  0xdb   : > { %s627_s18 = scalar_lea.hbm %s905_s3, 32 }
  0xdc   : > { %p628_p4 = scmp.ne.s32.totalorder %s905_s3, %s627_s18  ;;  %p633_p13 = scmp.lt.u32.totalorder %s627_s18, %s905_s3 }
  0xde   : > { %p629_p1 = pnand %p628_p4, %p858_p7 }
  0xe0   : > { %p630_p5 = pneg %p629_p1 }
  0xe2   : > { %p635_p10 = pnand %p633_p13, %p630_p5 }
  0xe4   : > { %638 = shalt.err (!%p635_p10)
}
  0xe5   : > { %508 = dma.vmem_to_hbm [thread:$0]  (%p858_p7), %s411_s9, 32, %s905_s3, [#allocation4]  }
  0xe6   : > { %668 = dma.done.wait (%p858_p7), [#allocation4], 32  }
  0xe7   : > { %670 = vsyncadd (%p858_p7), [#allocation4], 4294967264 }
  0xe8 PF: > { %s17_s17 = sadd.s32 1, %s693_s17   ;;  %s912_s12 = smov %s677_s13 }
  0xe9   : > { %p14_p9 = scmp.ge.s32.totalorder %s17_s17, 4   ;;  %s913_s13 = smov %s681_s14 }
  0xea   : > { %s914_s14 = smov %s772_s24  ;;  %s915_s15 = smov %s689_s16 }
  0xeb   : > { %s916_s16 = smov %s918_s19  ;;  %16 = sbr.rel (!%p14_p9) target bundleno = 5 (0x5), region = 76 }
  0xf2   :  { %423 = vsyncpa [#allocation3], 1 }
  0xf3   :  { %425 = vsyncpa [#allocation3 + $0x1], 1 }
  0xf4   :  { %426 = vsyncpa [#allocation4], 1 }
  0xf5   :  { %428 = vsyncpa [#allocation4 + $0x1], 1 }

</bundles_post_ra>
